<compile_context>
chip_gen: v6e
topology: v6e:2x2x1
jax: 0.10.0
libtpu: 0.0.40
codegen_flags: <defaults>
</compile_context>

<pallas_src>
import functools

import jax
import jax.numpy as jnp
from jax import lax
from jax.experimental import pallas as pl
from jax.experimental.pallas import tpu as pltpu


# ---------------------------------------------------------------------------
# Helpers
# ---------------------------------------------------------------------------
def _round_up(v, m):
    return ((v + m - 1) // m) * m


def _vmem_limits():
    """Generation-aware (vmem_limit_bytes, blockspec_budget_bytes)."""
    try:
        cap = int(pltpu.get_tpu_info().vmem_capacity_bytes)
    except Exception:
        cap = 64 * 1024 * 1024          # conservative (v7x-sized) fallback
    if cap <= 0:
        cap = 64 * 1024 * 1024
    limit = max(32 << 20, min(int(cap * 0.85), cap - (8 << 20)))
    limit = min(limit, cap)
    budget = max(8 << 20, int(limit * 0.8))
    return limit, budget


def _pick_gram_rows(np_pool, c, itemsize, budget):
    """Pass-1 pooled-position tile (multiple of 16, capped at 512 rows)."""
    per_row = 2 * 4 * c * itemsize              # double-buffered (1,4,tq,C) block
    tq = budget // max(per_row, 1)
    tq = max(16, min(512, (tq // 16) * 16))
    return min(tq, _round_up(np_pool, 16))


def _pick_cols(hw, per_col, budget):
    """Pass-2 HW-column tile: multiple of 128 dividing hw_pad; returns (tn, hw_pad)."""
    max_cols = max(128, budget // max(per_col, 1))
    if hw % 128 == 0:
        best = 128
        for d in range(128, min(hw, max_cols) + 1, 128):
            if hw % d == 0:
                best = d
        return best, hw
    if hw * per_col <= budget:                   # full-HW block (lane dim = full dim)
        return hw, hw
    hw_pad = _round_up(hw, 128)                  # rare fallback: pad columns
    best = 128
    for d in range(128, min(hw_pad, max_cols) + 1, 128):
        if hw_pad % d == 0:
            best = d
    return best, hw_pad


# ---------------------------------------------------------------------------
# Pass 1: per-batch pooled gram K[b] = Phi_pool^T @ G_pool  (Ci x Ci)
#   x layout: (B, 4, Np_pad, C); axis 1 = position inside the 2x2 pool window.
#   One fused (4*tq, C) @ (C, 2*Ci) projection per grid step.
# ---------------------------------------------------------------------------
def _gram_kernel(x_ref, pgw_ref, pgb_ref, k_ref, *, ci):
    @pl.when(pl.program_id(1) == 0)
    def _():
        k_ref[...] = jnp.zeros_like(k_ref)

    xb = x_ref[0]                                  # (4, TQ, C)
    four, tq, c = xb.shape
    xb = xb.reshape(four * tq, c)                  # merge window axis into rows (tq % 16 == 0)

    # Single tall matmul for phi and g together: (4*TQ, C) @ (C, 2*Ci).
    proj = jnp.dot(xb, pgw_ref[...], preferred_element_type=jnp.float32)
    proj = proj.reshape(four, tq, 2 * ci)

    # 2x2 max-pool = max over the 4 window slices; bias added once, after the max.
    pooled = jnp.max(proj, axis=0) + pgb_ref[...]  # (TQ, 2*Ci) f32

    phi_p = pooled[:, :ci]
    g_p = pooled[:, ci:]

    # (TQ, Ci)^T @ (TQ, Ci) -> (Ci, Ci), accumulated into the resident block.
    k_ref[0] += lax.dot_general(phi_p, g_p, (((0,), (0,)), ((), ())),
                                preferred_element_type=jnp.float32)


# ---------------------------------------------------------------------------
# Pass 2: weight-stationary NCHW matmul  z[b] = Weff[b]^T @ x[b] + beff[b]
#   x viewed as (B, C, H*W); output written directly as (B, Ci, H*W).
# ---------------------------------------------------------------------------
def _apply_kernel(x_ref, w_ref, b_ref, o_ref):
    w = w_ref[0]                                   # (Ci, C) compute dtype
    x = x_ref[0].astype(w.dtype)                   # (C, TN) cast in VMEM (no HBM cast pass)
    acc = jnp.dot(w, x, preferred_element_type=jnp.float32)   # (Ci, TN) f32
    o_ref[0] = (acc + b_ref[0]).astype(o_ref.dtype)           # lane-dense store


# ---------------------------------------------------------------------------
# Wrapper
# ---------------------------------------------------------------------------
def nonlocal_block_nd(x_nchw, params, *, compute_dtype=jnp.bfloat16, tile_rows=None):
    """NonLocalBlockND forward (dim=2, sub_sample=True, stride=2).

    x_nchw: (B, C, H, W)  ->  (B, Ci, H, W)

    compute_dtype: MXU operand dtype (default bf16; accumulation & biases stay
    f32). NOTE: bf16 quantizes x before projection+pooling — an intentional
    approximation vs a pure-f32 PyTorch module.
    """
    B, C, H, W = x_nchw.shape
    Ci = params["theta_w"].shape[1]
    assert H % 2 == 0 and W % 2 == 0, "2x2 max-pool requires even H, W"
    Hp, Wp = H // 2, W // 2
    Np = Hp * Wp
    HW = H * W
    out_dtype = x_nchw.dtype
    f32 = jnp.float32
    cdt = jnp.dtype(compute_dtype) if compute_dtype is not None else jnp.dtype(out_dtype)

    vmem_limit, budget = _vmem_limits()

    # ---- Pass-1 tiling over pooled positions --------------------------------
    if tile_rows is not None:
        tq = max(16, (int(tile_rows) // 16) * 16)
        tq = min(tq, _round_up(Np, 16))
    else:
        tq = _pick_gram_rows(Np, C, cdt.itemsize, budget)
    np_pad = _round_up(Np, tq)
    n_t = np_pad // tq

    # NCHW -> (B, 4, Np, C): k = dh*2+dw, pooled window index = hi*Wp+wi.
    # Single activation re-layout pass, consumed ONLY by Pass 1 (in compute dtype).
    xp = jnp.transpose(x_nchw, (0, 2, 3, 1)).reshape(B, Hp, 2, Wp, 2, C)
    xp = jnp.transpose(xp, (0, 2, 4, 1, 3, 5)).reshape(B, 4, Np, C)
    if np_pad != Np:
        xp = jnp.pad(xp, ((0, 0), (0, 0), (0, np_pad - Np), (0, 0)))
    xp = xp.astype(cdt)

    # Fused phi/g projection weights: (C, 2*Ci) and (1, 2*Ci).
    pg_w = jnp.concatenate([params["phi_w"], params["g_w"]], axis=1).astype(cdt)
    pg_b = jnp.concatenate([params["phi_b"], params["g_b"]], axis=1).astype(f32)

    # ---- Pass 1: K[b] = Phi_pool^T @ G_pool ---------------------------------
    gram = pl.pallas_call(
        functools.partial(_gram_kernel, ci=Ci),
        out_shape=jax.ShapeDtypeStruct((B, Ci, Ci), f32),
        grid=(B, n_t),
        in_specs=[pl.BlockSpec((1, 4, tq, C), lambda b, t: (b, 0, t, 0)),
                  pl.BlockSpec(pg_w.shape, lambda b, t: (0, 0)),
                  pl.BlockSpec(pg_b.shape, lambda b, t: (0, 0))],
        out_specs=pl.BlockSpec((1, Ci, Ci), lambda b, t: (b, 0, 0)),
        compiler_params=pltpu.CompilerParams(
            dimension_semantics=("parallel", "arbitrary"),
            vmem_limit_bytes=vmem_limit),
    )(xp, pg_w, pg_b)

    # Padded (zero) rows contribute exactly outer(phi_b, g_b) each -> subtract
    # in f32 here instead of masking every tile in-kernel.
    if np_pad != Np:
        pad_corr = (np_pad - Np) * jnp.outer(params["phi_b"].astype(f32)[0],
                                             params["g_b"].astype(f32)[0])
        gram = gram - pad_corr[None]

    # ---- Fold theta / W / reduct / biases into one per-batch 1x1 conv -------
    #   z[q] = x[q] @ (theta_w @ (K/Np) @ W_w + reduct_w)
    #          + theta_b @ (K/Np) @ W_w + W_b + reduct_b
    kw = jnp.einsum("bij,jk->bik", gram, params["W_w"].astype(f32)) / float(Np)
    w_eff = (jnp.einsum("cj,bjk->bck", params["theta_w"].astype(f32), kw)
             + params["reduct_w"].astype(f32)[None])                              # (B, C, Ci)
    b_eff = (jnp.einsum("ij,bjk->bik", params["theta_b"].astype(f32), kw)
             + (params["W_b"].astype(f32) + params["reduct_b"].astype(f32))[None])  # (B, 1, Ci)
    w_eff_t = jnp.transpose(w_eff, (0, 2, 1)).astype(cdt)   # (B, Ci, C)
    b_eff_t = jnp.transpose(b_eff, (0, 2, 1))                # (B, Ci, 1) f32

    # ---- Pass 2: z = Weff^T @ x (NCHW, weight-stationary) -------------------
    x2 = x_nchw.reshape(B, C, HW)                            # free reshape of NCHW
    per_col = 2 * (C * x2.dtype.itemsize + Ci * jnp.dtype(out_dtype).itemsize)
    tn, hw_pad = _pick_cols(HW, per_col, budget)
    if hw_pad != HW:
        x2 = jnp.pad(x2, ((0, 0), (0, 0), (0, hw_pad - HW)))
    n_c = hw_pad // tn

    out = pl.pallas_call(
        _apply_kernel,
        out_shape=jax.ShapeDtypeStruct((B, Ci, hw_pad), out_dtype),
        grid=(B, n_c),
        in_specs=[pl.BlockSpec((1, C, tn), lambda b, j: (b, 0, j)),
                  pl.BlockSpec((1, Ci, C), lambda b, j: (b, 0, 0)),
                  pl.BlockSpec((1, Ci, 1), lambda b, j: (b, 0, 0))],
        out_specs=pl.BlockSpec((1, Ci, tn), lambda b, j: (b, 0, j)),
        compiler_params=pltpu.CompilerParams(
            dimension_semantics=("parallel", "parallel"),
            vmem_limit_bytes=vmem_limit),
    )(x2, w_eff_t, b_eff_t)

    if hw_pad != HW:
        out = out[:, :, :HW]
    return out.reshape(B, Ci, H, W)                          # free reshape, no transpose


# ----------------------- plain-JAX reference (for validation) ---------------
def _reference(x, params):
    B, C, H, W = x.shape

    def conv1x1(a, w, b):
        return jnp.einsum("bchw,cd->bdhw", a, w) + b[0][None, :, None, None]

    def maxpool2(a):
        B_, C_, H_, W_ = a.shape
        return jnp.max(a.reshape(B_, C_, H_ // 2, 2, W_ // 2, 2), axis=(3, 5))

    g_x = maxpool2(conv1x1(x, params["g_w"], params["g_b"]))
    Ci = g_x.shape[1]
    g_x = g_x.reshape(B, Ci, -1).transpose(0, 2, 1)
    theta_x = conv1x1(x, params["theta_w"], params["theta_b"]).reshape(B, Ci, -1)
    theta_x = theta_x.transpose(0, 2, 1)
    phi_x = maxpool2(conv1x1(x, params["phi_w"], params["phi_b"])).reshape(B, Ci, -1)
    f = jnp.matmul(theta_x, phi_x)
    f_div_C = f / f.shape[-1]
    y = jnp.matmul(f_div_C, g_x).transpose(0, 2, 1).reshape(B, Ci, H, W)
    W_y = conv1x1(y, params["W_w"], params["W_b"])
    red = conv1x1(x, params["reduct_w"], params["reduct_b"])
    return W_y + red


if __name__ == "__main__":
    B, C, H, W = 2, 4, 16, 16
    Ci = max(C // 2, 1)

    key = jax.random.PRNGKey(0)
    ks = jax.random.split(key, 12)
    # 1x1 conv weights stored as (in, out) matrices; biases as (1, out).
    # NOTE: the PyTorch module zero-inits self.W (weight & bias), making the
    # non-local branch a no-op at init.  We use a nonzero W here so the
    # attention path is actually exercised/validated.
    params = {
        "theta_w":  0.1 * jax.random.normal(ks[0], (C, Ci), jnp.float32),
        "theta_b":  0.1 * jax.random.normal(ks[1], (1, Ci), jnp.float32),
        "phi_w":    0.1 * jax.random.normal(ks[2], (C, Ci), jnp.float32),
        "phi_b":    0.1 * jax.random.normal(ks[3], (1, Ci), jnp.float32),
        "g_w":      0.1 * jax.random.normal(ks[4], (C, Ci), jnp.float32),
        "g_b":      0.1 * jax.random.normal(ks[5], (1, Ci), jnp.float32),
        "W_w":      0.1 * jax.random.normal(ks[6], (Ci, Ci), jnp.float32),
        "W_b":      0.1 * jax.random.normal(ks[7], (1, Ci), jnp.float32),
        "reduct_w": 0.1 * jax.random.normal(ks[8], (C, Ci), jnp.float32),
        "reduct_b": jnp.zeros((1, Ci), jnp.float32),
    }

    x = jax.random.normal(ks[10], (B, C, H, W), jnp.float32)
    z_ref = _reference(x, params)

    # 1) f32 compute, default tiling (single gram tile at this size)
    z = nonlocal_block_nd(x, params, compute_dtype=jnp.float32)
    jax.block_until_ready(z)
    assert z.shape == (B, Ci, H, W)
    assert jnp.allclose(z, z_ref, atol=2e-4, rtol=2e-4), "mismatch (f32 default)"

    # 2) multi-tile grid over pooled positions (exercises K accumulation), f32
    z2 = nonlocal_block_nd(x, params, compute_dtype=jnp.float32, tile_rows=16)
    jax.block_until_ready(z2)
    assert jnp.allclose(z2, z_ref, atol=2e-4, rtol=2e-4), "mismatch (tiled)"

    # 3) non-divisible pooled-position count + non-128-multiple HW
    #    (exercises the padded-row bias correction and the full-HW Pass-2 block)
    x3 = jax.random.normal(ks[11], (B, C, 18, 18), jnp.float32)
    z3 = nonlocal_block_nd(x3, params, compute_dtype=jnp.float32)
    jax.block_until_ready(z3)
    assert jnp.allclose(z3, _reference(x3, params), atol=2e-4, rtol=2e-4), \
        "mismatch (padded)"

    # 4) default bf16 MXU operands with f32 accumulation (loose tolerance)
    z4 = nonlocal_block_nd(x, params)
    jax.block_until_ready(z4)
    assert jnp.allclose(z4, z_ref, atol=5e-2, rtol=5e-2), "mismatch (bf16 default)"

    print("KERNEL_OK")
</pallas_src>

<mosaic_0001>
module attributes {stable_mosaic.version = 11 : i64} {
  func.func @_gram_kernel(%arg0: i32, %arg1: i32, %arg2: memref<1x4x64x4xf32, #tpu.memory_space<vmem>>, %arg3: memref<4x4xf32, #tpu.memory_space<vmem>>, %arg4: memref<1x4xf32, #tpu.memory_space<vmem>>, %arg5: memref<1x2x2xf32, #tpu.memory_space<vmem>>) attributes {dimension_semantics = [#tpu.dimension_semantics<parallel>, #tpu.dimension_semantics<arbitrary>], iteration_bounds = array<i64: 2, 1>, scalar_prefetch = 0 : i64, scratch_operands = 0 : i64, tpu.core_type = #tpu.core_type<tc>, window_params = [{transform_indices = @transform_0, window_bounds = array<i64: 1, 4, 64, 4>}, {pipeline_mode = #tpu.pipeline_mode<synchronous>, transform_indices = @transform_1, window_bounds = array<i64: 4, 4>}, {pipeline_mode = #tpu.pipeline_mode<synchronous>, transform_indices = @transform_2, window_bounds = array<i64: 1, 4>}, {transform_indices = @transform_3, window_bounds = array<i64: 1, 2, 2>}]} {
    %c0_i32 = arith.constant 0 : i32
    %0 = arith.cmpi eq, %arg1, %c0_i32 : i32
    %1 = arith.extui %0 : i1 to i32
    %c0_i32_0 = arith.constant 0 : i32
    %2 = arith.cmpi ne, %1, %c0_i32_0 : i32
    scf.if %2 {
      %cst_16 = arith.constant 0.000000e+00 : f32
      %22 = vector.broadcast %cst_16 : f32 to vector<1x2x2xf32>
      %c0_17 = arith.constant 0 : index
      %c0_18 = arith.constant 0 : index
      %c0_19 = arith.constant 0 : index
      %23 = vector.load %arg5[%c0_17, %c0_18, %c0_19] : memref<1x2x2xf32, #tpu.memory_space<vmem>>, vector<1x2x2xf32>
      tpu.vector_store %arg5[%c0_17, %c0_18, %c0_19], %22 {strides = array<i32>} : memref<1x2x2xf32, #tpu.memory_space<vmem>>, vector<1x2x2xf32>,
    } else {
    }
    %c0 = arith.constant 0 : index
    %c0_1 = arith.constant 0 : index
    %c0_2 = arith.constant 0 : index
    %c0_3 = arith.constant 0 : index
    %3 = vector.load %arg2[%c0, %c0_1, %c0_2, %c0_3] : memref<1x4x64x4xf32, #tpu.memory_space<vmem>>, vector<1x4x64x4xf32>
    %4 = vector.shape_cast %3 : vector<1x4x64x4xf32> to vector<4x64x4xf32>
    %5 = vector.shape_cast %4 : vector<4x64x4xf32> to vector<256x4xf32>
    %c0_4 = arith.constant 0 : index
    %c0_5 = arith.constant 0 : index
    %6 = vector.load %arg3[%c0_4, %c0_5] : memref<4x4xf32, #tpu.memory_space<vmem>>, vector<4x4xf32>
    %cst = arith.constant dense<0.000000e+00> : vector<256x4xf32>
    %7 = tpu.matmul %5, %6, %cst {dimension_numbers = #tpu.dot_dimension_numbers<[1], [0], [0], [1], [0, 0, 1, 1], [], []>} : vector<256x4xf32>, vector<4x4xf32>, vector<256x4xf32> -> vector<256x4xf32>
    %8 = vector.shape_cast %7 : vector<256x4xf32> to vector<4x64x4xf32>
    %cst_6 = arith.constant dense<0xFF800000> : vector<64x4xf32>
    %9 = vector.multi_reduction <maximumf>, %8, %cst_6 [0] : vector<4x64x4xf32> to vector<64x4xf32>
    %c0_7 = arith.constant 0 : index
    %c0_8 = arith.constant 0 : index
    %10 = vector.load %arg4[%c0_7, %c0_8] : memref<1x4xf32, #tpu.memory_space<vmem>>, vector<1x4xf32>
    %11 = vector.broadcast %10 : vector<1x4xf32> to vector<64x4xf32>
    %12 = arith.addf %9, %11 : vector<64x4xf32>
    %13 = vector.extract_strided_slice %12 {offsets = [0, 0], sizes = [64, 2], strides = [1, 1]} : vector<64x4xf32> to vector<64x2xf32>
    %14 = vector.extract_strided_slice %12 {offsets = [0, 2], sizes = [64, 2], strides = [1, 1]} : vector<64x4xf32> to vector<64x2xf32>
    %c0_9 = arith.constant 0 : index
    %c0_10 = arith.constant 0 : index
    %c0_11 = arith.constant 0 : index
    %15 = vector.load %arg5[%c0_9, %c0_10, %c0_11] : memref<1x2x2xf32, #tpu.memory_space<vmem>>, vector<1x2x2xf32>
    %16 = vector.shape_cast %15 : vector<1x2x2xf32> to vector<2x2xf32>
    %cst_12 = arith.constant dense<0.000000e+00> : vector<2x2xf32>
    %17 = tpu.matmul %13, %14, %cst_12 {dimension_numbers = #tpu.dot_dimension_numbers<[0], [0], [1], [1], [0, 1, 1, 1], [], []>} : vector<64x2xf32>, vector<64x2xf32>, vector<2x2xf32> -> vector<2x2xf32>
    %18 = arith.addf %16, %17 : vector<2x2xf32>
    %c0_13 = arith.constant 0 : index
    %c0_14 = arith.constant 0 : index
    %c0_15 = arith.constant 0 : index
    %19 = vector.load %arg5[%c0_13, %c0_14, %c0_15] : memref<1x2x2xf32, #tpu.memory_space<vmem>>, vector<1x2x2xf32>
    %20 = vector.shape_cast %19 : vector<1x2x2xf32> to vector<2x2xf32>
    %21 = vector.shape_cast %18 : vector<2x2xf32> to vector<1x2x2xf32>
    tpu.vector_store %arg5[%c0_13, %c0_14, %c0_15], %21 {strides = array<i32>} : memref<1x2x2xf32, #tpu.memory_space<vmem>>, vector<1x2x2xf32>,
    return
  }
  func.func @transform_0(%arg0: i32, %arg1: i32) -> (i32, i32, i32, i32) {
    %c0_i32 = arith.constant 0 : i32
    %c0_i32_0 = arith.constant 0 : i32
    %c0_i32_1 = arith.constant 0 : i32
    return %arg0, %c0_i32, %arg1, %c0_i32_0 : i32, i32, i32, i32
  }
  func.func @transform_1(%arg0: i32, %arg1: i32) -> (i32, i32) {
    %c0_i32 = arith.constant 0 : i32
    %c0_i32_0 = arith.constant 0 : i32
    %c0_i32_1 = arith.constant 0 : i32
    return %c0_i32, %c0_i32_0 : i32, i32
  }
  func.func @transform_2(%arg0: i32, %arg1: i32) -> (i32, i32) {
    %c0_i32 = arith.constant 0 : i32
    %c0_i32_0 = arith.constant 0 : i32
    %c0_i32_1 = arith.constant 0 : i32
    return %c0_i32, %c0_i32_0 : i32, i32
  }
  func.func @transform_3(%arg0: i32, %arg1: i32) -> (i32, i32, i32) {
    %c0_i32 = arith.constant 0 : i32
    %c0_i32_0 = arith.constant 0 : i32
    %c0_i32_1 = arith.constant 0 : i32
    return %arg0, %c0_i32, %c0_i32_0 : i32, i32, i32
  }
}

</mosaic_0001>

<bundles_post_ra>
// kernel: tpu_custom_call.1
= control target key start
LH: loop header
LB: loop body
LE: loop exit
PB: predicated region body
PF: predicated region fallthrough
CT: control target
= control target key end

     0   :  { %8 = vsyncpa [#allocation3], 0  ;;  %s1448_s0 = inlined_call_operand.vmem [shape: f32[2,4,64,4], index: 0, kind: input, shape index: {}]   ;;  %s1449_s1 = inlined_call_operand.vmem [shape: f32[4,4], index: 1, kind: input, shape index: {}]   ;;  %s1450_s2 = inlined_call_operand.vmem [shape: f32[1,4], index: 2, kind: input, shape index: {}]   ;;  %s1451_s3 = inlined_call_operand.hbm [shape: f32[2,2,2], index: 3, kind: output, shape index: {}]  }
   0x1   :  { %10 = vsyncpa [#allocation3 + $0x1], 0  ;;  %s1183_s12 = smov 0   ;;  %s1185_s13 = smov 0  }
   0x2   :  { %s1187_s14 = smov 0   ;;  %s1189_s15 = smov 0  }
   0x3   :  { %s1191_s16 = smov 0   ;;  %s1193_s17 = smov 0  }
   0x4 LB: > { %s862_s18 = sadd.s32 4294967295, %s1157_s17   ;;  %s863_s19 = sadd.s32 4294967294, %s1157_s17   ;;  %s1157_s17 = sphi %s1193_s17, %s16_s17   ;;  %s1153_s16 = sphi %s1191_s16, %s1458_s16   ;;  %s1149_s15 = sphi %s1189_s15, %s1457_s15   ;;  %s1145_s14 = sphi %s1187_s14, %s1456_s14   ;;  %s1141_s13 = sphi %s1185_s13, %s1455_s13   ;;  %s1137_s12 = sphi %s1183_s12, %s1454_s12  }
   0x5   : > { %s28_s20 = sadd.s32 1, %s1153_s16  ;;  %s105_s21 = sadd.s32 1, %s1145_s14 }
   0x6   : > { %p30_p0 = scmp.ge.s32.totalorder %s28_s20, 2  ;;  %p115_p1 = scmp.ne.s32.totalorder %s1145_s14, %s1141_s13 }
   0x7   : > { %p116_p2 = scmp.eq.s32.totalorder %s862_s18, 1  ;;  %p121_p3 = scmp.ne.s32.totalorder %s1141_s13, %s1137_s12 }
   0x8   : > { %s1460_s20 = smov (%p30_p0, %s28_s20), 0  ;;  %p122_p5 = scmp.eq.s32.totalorder %s863_s19, 1 }
   0x9   : > { %p1223_p4 = por %p116_p2, %p115_p1  ;;  %s102_s23 = ssub.s32 %s1153_s16, %s1460_s20 }
   0xa   : > { %p866_p6 = scmp.ge.s32.totalorder %s1157_s17, 1  ;;  %p103_p7 = scmp.eq.s32.totalorder %s102_s23, 0 }
   0xb   : > { %p1230_p8 = por %p122_p5, %p121_p3  ;;  %p159_p9 = scmp.lt.s32.totalorder %s1157_s17, 3 }
   0xc   : > { %s1236_s25 = scalar_select %p103_p7, %s1145_s14, %s105_s21  }
   0xd   : > { %p160_p10 = pnand %p866_p6, %p159_p9 }
   0xe   : > { %p188_p11 = scmp.lt.s32.totalorder (!%p160_p10), %s1149_s15, 1  ;;  %s1160_s8 = smov (!%p160_p10), 126  }
   0xf   : > { %163 = sbr.rel (%p160_p10) target bundleno = 627 (0x273), region = 32  ;;  %s184_s9 = sand.u32 (!%p160_p10), 1, %s1141_s13  }
  0x10   : > { %s867_s10 = sshll.u32 (!%p160_p10), %s184_s9, 1  ;;  %s906_s18 = sshll.u32 (!%p160_p10), %s1149_s15, 5 }
  0x11   : > { %s1385_s11 = scalar_lea.vmem (!%p160_p10), [#allocation2], %s867_s10  ;;  %s1404_s26 = scalar_lea.hbm (!%p160_p10), %s1451_s3, %s906_s18 }
  0x12   : > { %s789_s19 = sshll.u32 (!%p160_p10), %s1385_s11, 4  ;;  %s776_s27 = scalar_lea.sflag (!%p160_p10), [#allocation3], %s184_s9  ;;  %s790_s19 = int_to_ptr.vmem [resolvable:$true] %s789_s19 }
  0x14   : > { %v235_v0 = vld [vmem:[%s1449_s1] sm:$0xf]  ;;  %vm333_vm0 = vcmask 1043456   ;;  %s189_s28 = scalar_select %p188_p11, %s1149_s15, 1  ;;  %vm236_vm1 = vcmask 31744   ;;  %v1159_v57 = vmov 0.0  }
  0x15   : > { %952 = vmatprep.subr.msk.mxu0 %vm333_vm0, %v235_v0  ;;  %1021 = vmatprep.subr.msk.mxu1 %vm333_vm0, %v235_v0  ;;  %vm1161_vm2 = vmmov 0   ;;  %vm201_vm3 = vcmask 9216   ;;  %vm698_vm4 = vcmask 523264   ;;  %s1162_s15 = smov [#allocation2]  }
  0x16   : > { %953 = vmatpush3.msk.msra.mxu0 %vm333_vm0, %v235_v0  ;;  %1022 = vmatpush3.msk.msra.mxu1 %vm333_vm0, %v235_v0  ;;  %s909_s29 = sshll.u32 %s189_s28, 8  ;;  %202 = vst.msk [vmem:[%s1385_s11] sm:$0x3] %vm201_vm3, %v1159_v57  ;;  %s1081_s28 = scalar_lea.vmem %s790_s19, 32 }
  0x17   : > { %s1246_s5 = scalar_lea.vmem %s1448_s0, %s909_s29  ;;  %1002 = vmatprep.subr.mxu1 %v1159_v57  ;;  %p1082_p12 = scmp.ne.s32.totalorder %s790_s19, %s1081_s28 }
  0x18   : > { %v203_v1 = vld [vmem:[%s1246_s5] sm:$0xff]  ;;  %v204_v2 = vld [vmem:[%s1246_s5 + $0x8] sm:$0xff]  ;;  %v205_v3 = vld [vmem:[%s1246_s5 + $0x10] sm:$0xff]  ;;  %s1085_s29 = sshll.u32 %s1162_s15, 4  ;;  %s1086_s29 = int_to_ptr.vmem [resolvable:$false] %s1085_s29 }
  0x19   : > { %954 = vmatprep.mubr.msk.f32.mxu0 %vm236_vm1, %v203_v1  ;;  %v221_v4 = vld [vmem:[%s1246_s5 + $0x90] sm:$0xff]  ;;  %v222_v5 = vld [vmem:[%s1246_s5 + $0x98] sm:$0xff]  ;;  %v223_v6 = vld [vmem:[%s1246_s5 + $0xa0] sm:$0xff]  ;;  %p1083_p13 = pnand %p1082_p12, %p1223_p4  ;;  %s1087_s30 = scalar_lea.vmem %s1086_s29, 64 }
  0x1a   : > { %955 = vmatmul.mubr.msk.f32.vlgmr.msra.gmra.mxu0 %vm236_vm1, %v204_v2  ;;  %981 = vmatprep.mubr.msk.f32.mxu1 %vm236_vm1, %v221_v4  ;;  %v206_v7 = vld [vmem:[%s1246_s5 + $0x18] sm:$0xff]  ;;  %v207_v8 = vld [vmem:[%s1246_s5 + $0x20] sm:$0xff]  ;;  %v224_v9 = vld [vmem:[%s1246_s5 + $0xa8] sm:$0xff]  ;;  %p1088_p1 = scmp.lt.s32.totalorder %s790_s19, %s1086_s29  ;;  %p1089_p2 = scmp.lt.s32.totalorder %s1087_s30, %s1081_s28 }
  0x1b   : > { %957 = vmatprep.mubr.msk.f32.mxu0 %vm236_vm1, %v205_v3  ;;  %982 = vmatmul.mubr.msk.f32.vlgmr.msra.gmra.mxu1 %vm236_vm1, %v222_v5  ;;  %v225_v10 = vld [vmem:[%s1246_s5 + $0xb0] sm:$0xff]  ;;  %v208_v11 = vld [vmem:[%s1246_s5 + $0x28] sm:$0xff]  ;;  %v226_v13 = vld [vmem:[%s1246_s5 + $0xb8] sm:$0xff]  ;;  %p1084_p0 = pneg %p1083_p13 }
  0x1c   : > { %984 = vmatprep.mubr.msk.f32.mxu1 %vm236_vm1, %v223_v6  ;;  %v209_v12 = vld [vmem:[%s1246_s5 + $0x30] sm:$0xff]  ;;  %v227_v14 = vld [vmem:[%s1246_s5 + $0xc0] sm:$0xff]  ;;  %v210_v15 = vld [vmem:[%s1246_s5 + $0x38] sm:$0xff]  ;;  %p1090_p3 = por %p1089_p2, %p1088_p1 }
  0x1d   : > { %v211_v16 = vld [vmem:[%s1246_s5 + $0x40] sm:$0xff]  ;;  %v228_v17 = vld [vmem:[%s1246_s5 + $0xc8] sm:$0xff]  ;;  %v229_v18 = vld [vmem:[%s1246_s5 + $0xd0] sm:$0xff] }
  0x1e   : > { %958 = vmatmul.mubr.msk.f32.gmra.mxu0 %vm236_vm1, %v206_v7  ;;  %v212_v19 = vld [vmem:[%s1246_s5 + $0x48] sm:$0xff]  ;;  %v213_v20 = vld [vmem:[%s1246_s5 + $0x50] sm:$0xff]  ;;  %v230_v21 = vld [vmem:[%s1246_s5 + $0xd8] sm:$0xff]  ;;  %p1091_p5 = pnand %p1090_p3, %p1084_p0 }
  0x1f   : > { %960 = vmatprep.mubr.msk.f32.mxu0 %vm236_vm1, %v207_v8  ;;  %985 = vmatmul.mubr.msk.f32.gmra.mxu1 %vm236_vm1, %v224_v9  ;;  %v231_v22 = vld [vmem:[%s1246_s5 + $0xe0] sm:$0xff]  ;;  %v214_v23 = vld [vmem:[%s1246_s5 + $0x58] sm:$0xff]  ;;  %v232_v25 = vld [vmem:[%s1246_s5 + $0xe8] sm:$0xff] }
  0x20   : > { %987 = vmatprep.mubr.msk.f32.mxu1 %vm236_vm1, %v225_v10  ;;  %v215_v24 = vld [vmem:[%s1246_s5 + $0x60] sm:$0xff]  ;;  %v233_v26 = vld [vmem:[%s1246_s5 + $0xf0] sm:$0xff]  ;;  %v216_v27 = vld [vmem:[%s1246_s5 + $0x68] sm:$0xff] }
  0x21   : > { %v217_v28 = vld [vmem:[%s1246_s5 + $0x70] sm:$0xff]  ;;  %v234_v29 = vld [vmem:[%s1246_s5 + $0xf8] sm:$0xff]  ;;  %v219_v31 = vld [vmem:[%s1246_s5 + $0x80] sm:$0xff] }
  0x22   : > { %961 = vmatmul.mubr.msk.f32.gmra.mxu0 %vm236_vm1, %v208_v11  ;;  %v218_v30 = vld [vmem:[%s1246_s5 + $0x78] sm:$0xff]  ;;  %v220_v32 = vld [vmem:[%s1246_s5 + $0x88] sm:$0xff]  ;;  %v1334_v7 = vld [vmem:[%s1450_s2] ss:$0 sm:$0xff] }
  0x23   : > { %963 = vmatprep.mubr.msk.f32.mxu0 %vm236_vm1, %v209_v12  ;;  %988 = vmatmul.mubr.msk.f32.gmra.mxu1 %vm236_vm1, %v226_v13 }
  0x24   : > { %990 = vmatprep.mubr.msk.f32.mxu1 %vm236_vm1, %v227_v14 }
  0x26   : > { %964 = vmatmul.mubr.msk.f32.gmra.mxu0 %vm236_vm1, %v210_v15 }
  0x27   : > { %966 = vmatprep.mubr.msk.f32.mxu0 %vm236_vm1, %v211_v16  ;;  %991 = vmatmul.mubr.msk.f32.gmra.mxu1 %vm236_vm1, %v228_v17 }
  0x28   : > { %993 = vmatprep.mubr.msk.f32.mxu1 %vm236_vm1, %v229_v18 }
  0x2a   : > { %967 = vmatmul.mubr.msk.f32.gmra.mxu0 %vm236_vm1, %v212_v19 }
  0x2b   : > { %969 = vmatprep.mubr.msk.f32.mxu0 %vm236_vm1, %v213_v20  ;;  %994 = vmatmul.mubr.msk.f32.gmra.mxu1 %vm236_vm1, %v230_v21 }
  0x2c   : > { %996 = vmatprep.mubr.msk.f32.mxu1 %vm236_vm1, %v231_v22 }
  0x2e   : > { %970 = vmatmul.mubr.msk.f32.gmra.mxu0 %vm236_vm1, %v214_v23 }
  0x2f   : > { %972 = vmatprep.mubr.msk.f32.mxu0 %vm236_vm1, %v215_v24  ;;  %997 = vmatmul.mubr.msk.f32.gmra.mxu1 %vm236_vm1, %v232_v25 }
  0x30   : > { %999 = vmatprep.mubr.msk.f32.mxu1 %vm236_vm1, %v233_v26 }
  0x32   : > { %973 = vmatmul.mubr.msk.f32.gmra.mxu0 %vm236_vm1, %v216_v27 }
  0x33   : > { %975 = vmatprep.mubr.msk.f32.mxu0 %vm236_vm1, %v217_v28  ;;  %1000 = vmatmul.mubr.msk.f32.gmra.mxu1 %vm236_vm1, %v234_v29 }
  0x34   : > { %1018 = vmatprep.mubr.msk.f32.mxu1 %vm1161_vm2, %v1159_v57 }
  0x36   : > { %976 = vmatmul.mubr.msk.f32.gmra.mxu0 %vm236_vm1, %v218_v30 }
  0x37   : > { %978 = vmatprep.mubr.msk.f32.mxu0 %vm236_vm1, %v219_v31 }
  0x3a   : > { %979 = vmatmul.mubr.msk.f32.gmra.mxu0 %vm236_vm1, %v220_v32 }
  0xda   : > { %v956_v33 = vpop.f32.mrf.mxu0 }
  0xdb   : > { %v983_v34 = vpop.f32.mrf.mxu1  ;;  %v569_v62 = vsel %vm236_vm1, %v956_v33, -inf }
  0xdc   : > { %v1312_v35 = vpop.f32.mrf.mxu0  ;;  %v586_v60 = vsel %vm236_vm1, %v983_v34, -inf }
  0xdd   : > { %v493_v36 = vpop.f32.mrf.mxu1 }
  0xde   : > { %v959_v37 = vpop.f32.mrf.mxu0  ;;  %v579_v4 = vsel %vm236_vm1, %v493_v36, -inf }
  0xdf   : > { %v986_v38 = vpop.f32.mrf.mxu1  ;;  %v583_v54 = vsel %vm236_vm1, %v959_v37, -inf }
  0xe0   : > { %v413_v39 = vpop.f32.mrf.mxu0  ;;  %v600_v5 = vsel %vm236_vm1, %v986_v38, -inf }
  0xe1   : > { %v503_v40 = vpop.f32.mrf.mxu1  ;;  %v576_v8 = vsel %vm236_vm1, %v413_v39, -inf }
  0xe2   : > { %v962_v41 = vpop.f32.mrf.mxu0  ;;  %v593_v9 = vsel %vm236_vm1, %v503_v40, -inf }
  0xe3   : > { %v989_v42 = vpop.f32.mrf.mxu1  ;;  %v597_v3 = vsel %vm236_vm1, %v962_v41, -inf }
  0xe4   : > { %v423_v43 = vpop.f32.mrf.mxu0  ;;  %v614_v17 = vsel %vm236_vm1, %v989_v42, -inf }
  0xe5   : > { %v1314_v44 = vpop.f32.mrf.mxu1  ;;  %v590_v13 = vsel %vm236_vm1, %v423_v43, -inf  ;;  %v562_v43 = vsel %vm236_vm1, %v1312_v35, -inf }
  0xe6   : > { %v965_v45 = vpop.f32.mrf.mxu0 }
  0xe7   : > { %v1316_v46 = vpop.f32.mrf.mxu1  ;;  %v611_v23 = vsel %vm236_vm1, %v965_v45, -inf }
  0xe8   : > { %v433_v47 = vpop.f32.mrf.mxu0 }
  0xe9   : > { %v1318_v48 = vpop.f32.mrf.mxu1  ;;  %v604_v24 = vsel %vm236_vm1, %v433_v47, -inf  ;;  %v607_v47 = vsel %vm236_vm1, %v1314_v44, -inf }
  0xea   : > { %v968_v49 = vpop.f32.mrf.mxu0 }
  0xeb   : > { %v995_v50 = vpop.f32.mrf.mxu1  ;;  %v570_v25 = vsel %vm236_vm1, %v968_v49, -inf }
  0xec   : > { %v443_v51 = vpop.f32.mrf.mxu0  ;;  %v588_v61 = vsel %vm236_vm1, %v995_v50, -inf  ;;  %v571_v45 = vmax.f32 %v569_v62, %v570_v25 }
  0xed   : > { %v533_v52 = vpop.f32.mrf.mxu1  ;;  %v563_v27 = vsel %vm236_vm1, %v443_v51, -inf }
  0xee   : > { %v971_v53 = vpop.f32.mrf.mxu0  ;;  %v564_v50 = vmax.f32 %v562_v43, %v563_v27  ;;  %v581_v51 = vsel %vm236_vm1, %v533_v52, -inf  ;;  %v574_v52 = vsel %vm236_vm1, %v1316_v46, -inf }
  0xef   : > { %v584_v55 = vsel %vm236_vm1, %v971_v53, -inf  ;;  %v998_v56 = vpop.f32.mrf.mxu1 }
  0xf0   : > { %v585_v58 = vmax.f32 %v583_v54, %v584_v55  ;;  %v453_v59 = vpop.f32.mrf.mxu0  ;;  %v602_v16 = vsel %vm236_vm1, %v998_v56, -inf }
  0xf1   : > { %v577_v63 = vsel %vm236_vm1, %v453_v59, -inf  ;;  %v543_v2 = vpop.f32.mrf.mxu1 }
  0xf2   : > { %v587_v0 = vmax.f32 %v585_v58, %v586_v60  ;;  %v974_v1 = vpop.f32.mrf.mxu0  ;;  %v578_v14 = vmax.f32 %v576_v8, %v577_v63  ;;  %v595_v33 = vsel %vm236_vm1, %v543_v2, -inf  ;;  %v567_v63 = vsel %vm236_vm1, %v1318_v48, -inf }
  0xf3   : > { %v598_v6 = vsel %vm236_vm1, %v974_v1, -inf  ;;  %v1001_v21 = vpop.f32.mrf.mxu1 }
  0xf4   : > { %v589_v10 = vmax.f32 %v587_v0, %v588_v61  ;;  %v599_v11 = vmax.f32 %v597_v3, %v598_v6  ;;  %v463_v12 = vpop.f32.mrf.mxu0  ;;  %v580_v32 = vmax.f32 %v578_v14, %v579_v4  ;;  %v616_v34 = vsel %vm236_vm1, %v1001_v21, -inf }
  0xf5   : > { %v591_v15 = vsel %vm236_vm1, %v463_v12, -inf  ;;  %v553_v41 = vpop.f32.mrf.mxu1 }
  0xf6   : > { %v592_v18 = vmax.f32 %v590_v13, %v591_v15  ;;  %v601_v19 = vmax.f32 %v599_v11, %v600_v5  ;;  %v977_v20 = vpop.f32.mrf.mxu0  ;;  %v1343_v22 = vadd.f32 %v1334_v7, %v589_v10  ;;  %v582_v56 = vmax.f32 %v580_v32, %v581_v51  ;;  %v633_v13 = vld [vmem:[%s1385_s11] sm:$0x3] }
  0xf7   : > { %v612_v26 = vsel %vm236_vm1, %v977_v20, -inf  ;;  %v609_v59 = vsel %vm236_vm1, %v553_v41, -inf }
  0xf8   : > { %v603_v28 = vmax.f32 %v601_v19, %v602_v16  ;;  %v613_v29 = vmax.f32 %v611_v23, %v612_v26  ;;  %v594_v30 = vmax.f32 %v592_v18, %v593_v9  ;;  %680 = vrot.lane.b32.xlu0 %v1343_v22, %s1160_s8  ;;  %v473_v31 = vpop.f32.mrf.mxu0  ;;  %v627_v0 = vadd.f32 %v1334_v7, %v582_v56 }
  0xf9   : > { %v605_v36 = vsel %vm236_vm1, %v473_v31, -inf }
  0xfa   : > { %v596_v37 = vmax.f32 %v594_v30, %v595_v33  ;;  %v615_v38 = vmax.f32 %v613_v29, %v614_v17  ;;  %v606_v39 = vmax.f32 %v604_v24, %v605_v36  ;;  %v980_v40 = vpop.f32.mrf.mxu0  ;;  %v630_v42 = vadd.f32 %v1334_v7, %v603_v28 }
  0xfb   : > { %v572_v49 = vsel %vm236_vm1, %v980_v40, -inf }
  0xfc   : > { %v617_v53 = vmax.f32 %v615_v38, %v616_v34  ;;  %v608_v54 = vmax.f32 %v606_v39, %v607_v47  ;;  %684 = vrot.lane.b32.xlu1 %v630_v42, %s1160_s8  ;;  %v483_v55 = vpop.f32.mrf.mxu0  ;;  %v629_v58 = vadd.f32 %v1334_v7, %v596_v37  ;;  %v573_v44 = vmax.f32 %v571_v45, %v572_v49 }
  0xfd   : > { %v565_v35 = vsel %vm236_vm1, %v483_v55, -inf }
  0xfe   : > { %v632_v60 = vadd.f32 %v1334_v7, %v617_v53  ;;  %v610_v61 = vmax.f32 %v608_v54, %v609_v59  ;;  %v566_v62 = vmax.f32 %v564_v50, %v565_v35  ;;  %v575_v1 = vmax.f32 %v573_v44, %v574_v52 }
 0x100   : > { %682 = vrot.lane.b32.xlu1 %v629_v58, %s1160_s8  ;;  %688 = vrot.lane.b32.xlu0 %v632_v60, %s1160_s8  ;;  %v631_v2 = vadd.f32 %v1334_v7, %v610_v61  ;;  %v568_v3 = vmax.f32 %v566_v62, %v567_v63  ;;  %v626_v4 = vadd.f32 %v1334_v7, %v575_v1 }
 0x102   : > { %v625_v46 = vadd.f32 %v1334_v7, %v568_v3 }
 0x104   : > { %678 = vrot.lane.b32.xlu1 %v627_v0, %s1160_s8  ;;  %686 = vrot.lane.b32.xlu0 %v631_v2, %s1160_s8 }
 0x108   : > { %676 = vrot.lane.b32.xlu0 %v626_v4, %s1160_s8  ;;  %674 = vrot.lane.b32.xlu1 %v625_v46, %s1160_s8 }
 0x126   : > { %634 = vxpose.xlu0.b32.start [1/8] (short) (narrow) %v625_v46, 8 }
 0x12a   : > { %635 = vxpose.xlu0.b32.cont [2/8] (short) (narrow) %v626_v4, 8 }
 0x12e   : > { %636 = vxpose.xlu0.b32.cont [3/8] (short) (narrow) %v627_v0, 8 }
 0x132   : > { %637 = vxpose.xlu0.b32.cont [4/8] (short) (narrow) %v1343_v22, 8 }
 0x136   : > { %638 = vxpose.xlu0.b32.cont [5/8] (short) (narrow) %v629_v58, 8 }
 0x13a   : > { %639 = vxpose.xlu0.b32.cont [6/8] (short) (narrow) %v630_v42, 8 }
 0x13e   : > { %640 = vxpose.xlu0.b32.cont [7/8] (short) (narrow) %v631_v2, 8 }
 0x142   : > { %641 = vxpose.xlu0.b32.end [8/8] (short) (narrow) %v632_v60, 8 }
 0x16a   : > { %v681_v48 = vpop.permute.xlu0 %680 }
 0x16e   : > { %v685_v5 = vpop.permute.xlu1 %684 }
 0x172   : > { %v689_v6 = vpop.permute.xlu0 %688  ;;  %v683_v7 = vpop.permute.xlu1 %682 }
 0x173   : > { %1003 = vmatpush3.msra.mxu1 %v689_v6 }
 0x174   : > { %1004 = vmatprep.subr.mxu1 %v1159_v57 }
 0x176   : > { %v687_v8 = vpop.permute.xlu0 %686  ;;  %v679_v9 = vpop.permute.xlu1 %678 }
 0x177   : > { %1005 = vmatpush3.msra.mxu1 %v687_v8 }
 0x178   : > { %1006 = vmatprep.subr.mxu1 %v1159_v57 }
 0x179   : > { %1007 = vmatpush3.msra.mxu1 %v685_v5 }
 0x17a   : > { %1008 = vmatprep.subr.mxu1 %v1159_v57  ;;  %v677_v10 = vpop.permute.xlu0 %676  ;;  %v675_v11 = vpop.permute.xlu1 %674 }
 0x17b   : > { %1009 = vmatpush3.msra.mxu1 %v683_v7 }
 0x17c   : > { %1010 = vmatprep.subr.mxu1 %v1159_v57 }
 0x17d   : > { %1011 = vmatpush3.msra.mxu1 %v681_v48 }
 0x17e   : > { %1012 = vmatprep.subr.mxu1 %v1159_v57 }
 0x17f   : > { %1013 = vmatpush3.msra.mxu1 %v679_v9 }
 0x180   : > { %1014 = vmatprep.subr.mxu1 %v1159_v57 }
 0x181   : > { %1015 = vmatpush3.msra.mxu1 %v677_v10 }
 0x182   : > { %1016 = vmatprep.subr.mxu1 %v1159_v57 }
 0x183   : > { %1017 = vmatpush3.msra.mxu1 %v675_v11 }
 0x1a2   : > { %v650_v12 = vpop.trf.xlu0 }
 0x1a3   : > { %1019 = vmatmul.mubr.msk.f32.vlgmr.msra.gmra.mxu1 %vm698_vm4, %v650_v12 }
 0x263   : > { %v768_v14 = vpop.f32.mrf.mxu1 }
 0x264   : > { %v772_v15 = vadd.f32 %v768_v14, %v633_v13 }
 0x265   : > { %v1020_v16 = vpop.f32.mrf.mxu1 }
 0x266   : > { %774 = vst.msk [vmem:[%s1385_s11] sm:$0x3] %vm201_vm3, %v772_v15 }
 0x267   : > { %1094 = shalt.err (!%p1091_p5)
}
 0x268   : > { %s1095_s4 = scalar_lea.hbm %s1404_s26, 32  ;;  %s1099_s7 = scalar_lea.hbm %s1451_s3, 64 }
 0x269   : > { %p1096_p6 = scmp.ne.s32.totalorder %s1404_s26, %s1095_s4  ;;  %p1100_p10 = scmp.lt.s32.totalorder %s1404_s26, %s1451_s3 }
 0x26a   : > { %p1101_p11 = scmp.lt.s32.totalorder %s1099_s7, %s1095_s4 }
 0x26b   : > { %p1097_p7 = pnand %p1096_p6, %p1223_p4 }
 0x26c   : > { %p1102_p12 = por %p1101_p11, %p1100_p10 }
 0x26d   : > { %p1098_p9 = pneg %p1097_p7 }
 0x26f   : > { %p1103_p13 = pnand %p1102_p12, %p1098_p9 }
 0x271   : > { %1106 = shalt.err (!%p1103_p13)
}
 0x272   : > { %1023 = dma.vmem_to_hbm [thread:$0]  (%p1223_p4), %s790_s19, 32, %s1404_s26, %s776_s27  }
 0x273 PF: > { %p1029_p0 = scmp.ge.s32.totalorder %s1157_s17, 2  ;;  %s801_s10 = sand.u32 1, %s1137_s12  }
 0x274   : > { %s802_s11 = scalar_lea.sflag [#allocation3], %s801_s10 }
 0x275   : > { %p1026_p1 = pnand %p1029_p0, %p1230_p8 }
 0x277   : > { %p1027_p2 = pneg %p1026_p1 }
 0x279   : > { %1132 = dma.done.wait (%p1027_p2), %s802_s11, 32  }
 0x27a   : > { %1134 = vsyncadd (%p1027_p2), %s802_s11, 4294967264  ;;  %s16_s17 = sadd.s32 1, %s1157_s17   ;;  %s1454_s12 = smov %s1141_s13 }
 0x27b   : > { %p13_p3 = scmp.ge.s32.totalorder %s16_s17, 4   ;;  %s1455_s13 = smov %s1145_s14 }
 0x27c   : > { %s1456_s14 = smov %s1236_s25  ;;  %s1457_s15 = smov %s1153_s16 }
 0x27d   : > { %s1458_s16 = smov %s1460_s20  ;;  %15 = sbr.rel (!%p13_p3) target bundleno = 4 (0x4), region = 71 }
 0x282   :  { %807 = vsyncpa [#allocation3], 1 }
 0x283   :  { %809 = vsyncpa [#allocation3 + $0x1], 1 }

</bundles_post_ra>
